<compile_context>
chip_gen: v5e
topology: v5e:2x2
jax: 0.10.0
libtpu: 0.0.40
codegen_flags: <defaults>
</compile_context>

<pallas_src>
import jax
import jax.numpy as jnp
from jax.experimental import pallas as pl
from jax.experimental.pallas import tpu as pltpu


def _sse_kernel(x_ref, w_ref, o_ref):
    # x_ref: (1, C, TILE_HW) -- one batch, all channels, a lane-dense spatial tile
    # w_ref: (C, 1)          -- 1x1 conv weight (C_in -> 1), no bias
    x = x_ref[0]                                     # (C, TILE_HW), native dtype
    w = w_ref[...].astype(jnp.float32)               # (C, 1)

    # 1x1 conv == channel-wise weighted sum at every spatial position.
    # Sublane reduce (VPU + XLU); accumulate in f32.
    q = jnp.sum(x.astype(jnp.float32) * w, axis=0, keepdims=True)  # (1, TILE_HW)
    q = jax.nn.sigmoid(q)                                          # spatial gate

    # Gate multiply in the input's native dtype (broadcast over sublanes/C).
    o_ref[0] = (x * q.astype(x.dtype)).astype(o_ref.dtype)


def sse_forward(u_nchw, weight_c1, *, target_block_bytes=2 << 20):
    """u_nchw: (B, C, H, W); weight_c1: (C, 1) == torch weight (1, C, 1, 1) squeezed."""
    B, C, H, W = u_nchw.shape
    HW = H * W
    x = u_nchw.reshape(B, C, HW)                     # free reshape, no transpose

    itemsize = jnp.dtype(u_nchw.dtype).itemsize
    lane = 128

    # Biggest lane-dense tile that keeps one block around target_block_bytes.
    max_tile = max(lane, (target_block_bytes // max(1, C * itemsize)) // lane * lane)
    hw_pad = ((HW + lane - 1) // lane) * lane
    tile_hw = min(hw_pad, max_tile)
    # Pad the flattened spatial axis so it divides the tile (padded zeros give
    # 0 * sigmoid(0) = 0 in the output and are sliced off afterwards).
    hw_pad = ((HW + tile_hw - 1) // tile_hw) * tile_hw
    if hw_pad != HW:
        x = jnp.pad(x, ((0, 0), (0, 0), (0, hw_pad - HW)))

    grid = (B, hw_pad // tile_hw)

    out_flat = pl.pallas_call(
        _sse_kernel,
        out_shape=jax.ShapeDtypeStruct((B, C, hw_pad), u_nchw.dtype),
        grid_spec=pltpu.PrefetchScalarGridSpec(
            num_scalar_prefetch=0,
            grid=grid,
            in_specs=[
                pl.BlockSpec((1, C, tile_hw), lambda b, j: (b, 0, j)),
                # tiny, constant block index -> fetched once, not re-streamed
                pl.BlockSpec((C, 1), lambda b, j: (0, 0)),
            ],
            out_specs=pl.BlockSpec((1, C, tile_hw), lambda b, j: (b, 0, j)),
        ),
        compiler_params=pltpu.CompilerParams(
            dimension_semantics=("parallel", "parallel"),
            vmem_limit_bytes=32 << 20,   # safe on v5e/v6e/v7x; blocks are ~2 MiB
        ),
    )(x, weight_c1)

    return out_flat[:, :, :HW].reshape(B, C, H, W)


def sse_reference(u_nchw, weight_c1):
    # Pure-JAX reference of the PyTorch forward.
    q = jnp.einsum("bchw,c->bhw", u_nchw.astype(jnp.float32),
                   weight_c1[:, 0].astype(jnp.float32))
    q = jax.nn.sigmoid(q)[:, None, :, :]          # (B, 1, H, W)
    return (u_nchw.astype(jnp.float32) * q).astype(u_nchw.dtype)


if __name__ == "__main__":
    key = jax.random.PRNGKey(0)
    k_x, k_w, k_x2 = jax.random.split(key, 3)

    B, C, H, W = 2, 4, 16, 16
    U = jax.random.normal(k_x, (B, C, H, W), dtype=jnp.float32)

    # Deterministic init mimicking nn.Conv2d default (kaiming-uniform-ish):
    # torch weight shape (1, C, 1, 1) -> stored here as (C, 1).
    bound = 1.0 / (C ** 0.5)
    weight = jax.random.uniform(k_w, (C, 1), dtype=jnp.float32,
                                minval=-bound, maxval=bound)

    out = jax.block_until_ready(sse_forward(U, weight))
    ref = sse_reference(U, weight)
    assert out.shape == (B, C, H, W)
    assert jnp.allclose(out, ref, atol=1e-5, rtol=1e-5), "mismatch vs reference"

    # Ragged spatial size (H*W not a multiple of 128) exercises the padding path.
    U2 = jax.random.normal(k_x2, (B, C, 10, 7), dtype=jnp.float32)
    out2 = jax.block_until_ready(sse_forward(U2, weight))
    ref2 = sse_reference(U2, weight)
    assert out2.shape == U2.shape
    assert jnp.allclose(out2, ref2, atol=1e-5, rtol=1e-5), "ragged mismatch vs reference"

    print("KERNEL_OK")
</pallas_src>

<mosaic_0001>
module attributes {stable_mosaic.version = 11 : i64} {
  func.func @_sse_kernel(%arg0: i32, %arg1: i32, %arg2: memref<1x4x256xf32, #tpu.memory_space<vmem>>, %arg3: memref<4x1xf32, #tpu.memory_space<vmem>>, %arg4: memref<1x4x256xf32, #tpu.memory_space<vmem>>) attributes {dimension_semantics = [#tpu.dimension_semantics<parallel>, #tpu.dimension_semantics<parallel>], iteration_bounds = array<i64: 2, 1>, scalar_prefetch = 0 : i64, scratch_operands = 0 : i64, tpu.core_type = #tpu.core_type<tc>, window_params = [{transform_indices = @transform_0, window_bounds = array<i64: 1, 4, 256>}, {pipeline_mode = #tpu.pipeline_mode<synchronous>, transform_indices = @transform_1, window_bounds = array<i64: 4, 1>}, {transform_indices = @transform_2, window_bounds = array<i64: 1, 4, 256>}]} {
    %c0 = arith.constant 0 : index
    %c0_0 = arith.constant 0 : index
    %c0_1 = arith.constant 0 : index
    %0 = vector.load %arg2[%c0, %c0_0, %c0_1] : memref<1x4x256xf32, #tpu.memory_space<vmem>>, vector<1x4x256xf32>
    %1 = vector.shape_cast %0 : vector<1x4x256xf32> to vector<4x256xf32>
    %c0_2 = arith.constant 0 : index
    %c0_3 = arith.constant 0 : index
    %2 = vector.load %arg3[%c0_2, %c0_3] : memref<4x1xf32, #tpu.memory_space<vmem>>, vector<4x1xf32>
    %3 = vector.broadcast %2 : vector<4x1xf32> to vector<4x256xf32>
    %4 = arith.mulf %1, %3 : vector<4x256xf32>
    %cst = arith.constant dense<0.000000e+00> : vector<256xf32>
    %5 = vector.multi_reduction <add>, %4, %cst [0] : vector<4x256xf32> to vector<256xf32>
    %6 = vector.shape_cast %5 : vector<256xf32> to vector<1x256xf32>
    %7 = arith.negf %6 : vector<1x256xf32>
    %8 = math.exp %7 : vector<1x256xf32>
    %cst_4 = arith.constant 1.000000e+00 : f32
    %9 = vector.broadcast %cst_4 : f32 to vector<1x256xf32>
    %10 = arith.addf %9, %8 : vector<1x256xf32>
    %11 = arith.divf %9, %10 : vector<1x256xf32>
    %12 = vector.broadcast %11 : vector<1x256xf32> to vector<4x256xf32>
    %13 = arith.mulf %1, %12 : vector<4x256xf32>
    %c0_5 = arith.constant 0 : index
    %c0_6 = arith.constant 0 : index
    %c0_7 = arith.constant 0 : index
    %14 = vector.load %arg4[%c0_5, %c0_6, %c0_7] : memref<1x4x256xf32, #tpu.memory_space<vmem>>, vector<1x4x256xf32>
    %15 = vector.shape_cast %14 : vector<1x4x256xf32> to vector<4x256xf32>
    %16 = vector.shape_cast %13 : vector<4x256xf32> to vector<1x4x256xf32>
    tpu.vector_store %arg4[%c0_5, %c0_6, %c0_7], %16 {strides = array<i32>} : memref<1x4x256xf32, #tpu.memory_space<vmem>>, vector<1x4x256xf32>,
    return
  }
  func.func @transform_0(%arg0: i32, %arg1: i32) -> (i32, i32, i32) {
    %c0_i32 = arith.constant 0 : i32
    %c0_i32_0 = arith.constant 0 : i32
    return %arg0, %c0_i32, %arg1 : i32, i32, i32
  }
  func.func @transform_1(%arg0: i32, %arg1: i32) -> (i32, i32) {
    %c0_i32 = arith.constant 0 : i32
    %c0_i32_0 = arith.constant 0 : i32
    %c0_i32_1 = arith.constant 0 : i32
    return %c0_i32, %c0_i32_0 : i32, i32
  }
  func.func @transform_2(%arg0: i32, %arg1: i32) -> (i32, i32, i32) {
    %c0_i32 = arith.constant 0 : i32
    %c0_i32_0 = arith.constant 0 : i32
    return %arg0, %c0_i32, %arg1 : i32, i32, i32
  }
}

</mosaic_0001>

<bundles_post_ra>
// kernel: tpu_custom_call.1
= control target key start
LH: loop header
LB: loop body
LE: loop exit
PB: predicated region body
PF: predicated region fallthrough
CT: control target
= control target key end

     0   :  { %7 = vsyncpa [#allocation3], 0  ;;  %s726_s0 = inlined_call_operand.hbm [shape: f32[2,4,256], index: 0, kind: input, shape index: {}]   ;;  %s727_s1 = inlined_call_operand.vmem [shape: f32[4,1], index: 1, kind: input, shape index: {}]   ;;  %s728_s2 = inlined_call_operand.hbm [shape: f32[2,4,256], index: 2, kind: output, shape index: {}]  }
   0x1   :  { %9 = vsyncpa [#allocation3 + $0x1], 0 }
   0x2   :  { %10 = vsyncpa [#allocation4], 0 }
   0x3   :  { %12 = vsyncpa [#allocation4 + $0x1], 0  ;;  %s586_s9 = smov 0   ;;  %s588_s10 = smov 0  }
   0x4   :  { %s590_s11 = smov 0   ;;  %s592_s12 = smov 0  }
   0x5   :  { %s594_s13 = smov 0   ;;  %s596_s14 = smov 0  }
   0x6 LB: > { %s363_s15 = sadd.s32 4294967295, %s567_s14   ;;  %s364_s16 = sadd.s32 4294967294, %s567_s14   ;;  %s567_s14 = sphi %s596_s14, %s18_s14   ;;  %s563_s13 = sphi %s594_s13, %s739_s13   ;;  %s559_s12 = sphi %s592_s12, %s738_s12   ;;  %s555_s11 = sphi %s590_s11, %s737_s11   ;;  %s551_s10 = sphi %s588_s10, %s736_s10   ;;  %s547_s9 = sphi %s586_s9, %s735_s9  }
   0x7   : > { %s30_s17 = sadd.s32 1, %s563_s13  ;;  %s39_s18 = sadd.s32 1, %s555_s11 }
   0x8   : > { %p32_p0 = scmp.ge.s32.totalorder %s30_s17, 2  ;;  %p46_p1 = scmp.ne.s32.totalorder %s555_s11, %s551_s10 }
   0x9   : > { %p47_p2 = scmp.eq.s32.totalorder %s567_s14, 0  ;;  %p52_p3 = scmp.ne.s32.totalorder %s551_s10, %s547_s9 }
   0xa   : > { %s741_s17 = smov (%p32_p0, %s30_s17), 0  ;;  %p53_p5 = scmp.eq.s32.totalorder %s363_s15, 0 }
   0xb   : > { %p627_p4 = por %p47_p2, %p46_p1  ;;  %s34_s20 = ssub.s32 %s563_s13, %s741_s17 }
   0xc   : > { %p99_p6 = scmp.eq.s32.totalorder %s363_s15, 1  ;;  %p37_p7 = scmp.eq.s32.totalorder %s34_s20, 0 }
   0xd   : > { %p633_p8 = por %p53_p5, %p52_p3  ;;  %p105_p10 = scmp.eq.s32.totalorder %s364_s16, 1 }
   0xe   : > { %p637_p9 = por %p99_p6, %p46_p1  ;;  %p366_p12 = scmp.ge.s32.totalorder %s567_s14, 2 }
   0xf   : > { %s642_s23 = scalar_select %p37_p7, %s555_s11, %s39_s18  }
  0x10   : > { %p644_p11 = por %p105_p10, %p52_p3  ;;  %p394_p13 = scmp.lt.s32.totalorder %s567_s14, 2 }
  0x11   : > { %s128_s25 = sand.u32 1, %s555_s11   ;;  %s380_s27 = sshll.u32 %s563_s13, 3 }
  0x12   : > { %s367_s26 = sshll.u32 %s128_s25, 3  ;;  %s139_s30 = scalar_lea.hbm %s726_s0, %s380_s27 }
  0x13   : > { %s132_s3 = scalar_lea.vmem [#allocation2], %s367_s26  ;;  %s141_s5 = sshll.u32 %s139_s30, 4  ;;  %s142_s5 = int_to_ptr.hbm [resolvable:$true] %s141_s5 }
  0x14   : > { %s143_s4 = sshll.u32 %s132_s3, 4  ;;  %p387_p0 = pnand %p394_p13, %p627_p4  ;;  %s144_s4 = int_to_ptr.vmem [resolvable:$true] %s143_s4 }
  0x15   : > { %p370_p1 = scmp.ge.s32.totalorder %s567_s14, 1  ;;  %p148_p2 = scmp.lt.s32.totalorder %s567_s14, 3 }
  0x16   : > { %s129_s6 = scalar_lea.sflag [#allocation3], %s128_s25 }
  0x17   : > { %389 = dma.hbm_to_vmem [thread:$0]  (!%p387_p0), %s142_s5, 128, %s144_s4, %s129_s6  }
  0x18   : > { %p149_p3 = pnand %p370_p1, %p148_p2 }
  0x19   : > { %s660_s7 = sand.u32 (!%p149_p3), 1, %s551_s10  }
  0x1a   : > { %152 = sbr.rel (%p149_p3) target bundleno = 211 (0xd3), region = 28  ;;  %s371_s8 = sshll.u32 (!%p149_p3), %s660_s7, 3 }
  0x1b   : > { %s155_s15 = scalar_lea.sflag (!%p149_p3), [#allocation3], %s660_s7  ;;  %s158_s16 = scalar_lea.vmem (!%p149_p3), [#allocation2], %s371_s8 }
  0x1f   : > { %538 = dma.done.wait (%p633_p8), %s155_s15, 128  }
  0x20   : > { %540 = vsyncadd (%p633_p8), %s155_s15, 4294967168  ;;  %v569_v0 = vmov 0   ;;  %v183_v1 = vld [vmem:[%s727_s1] sm:$0xf]  ;;  %v570_v2 = vmov 839922192  }
  0x21   : > { %446 = vset.pattern.permute.xlu0 %v569_v0  ;;  %v189_v3 = vunpack.c.l.s4 %v570_v2  ;;  %v673_v6 = vld [vmem:[%s158_s16] sm:$0xff]  ;;  %vm200_vm0 = vcmask 1043456   ;;  %s381_s20 = sshll.u32 %s559_s12, 3  ;;  %s179_s12 = scalar_lea.vmem [#allocation5], %s371_s8 }
  0x22   : > { %186 = vperm.xlu0 %446, %v183_v1   ;;  %s274_s26 = scalar_lea.hbm %s728_s2, %s381_s20  ;;  %s276_s27 = sshll.u32 %s179_s12, 4  ;;  %s277_s27 = int_to_ptr.vmem [resolvable:$true] %s276_s27 }
  0x23   : > { %v190_v4 = vunpack.c.0.s8 %v189_v3  ;;  %s278_s28 = sshll.u32 %s274_s26, 4  ;;  %s261_s29 = scalar_lea.sflag [#allocation4], %s660_s7  ;;  %s279_s28 = int_to_ptr.hbm [resolvable:$true] %s278_s28 }
  0x24   : > { %s499_s30 = sshra.s32 %s279_s28, 4  ;;  %s505_s6 = scalar_lea.hbm %s728_s2, 16  ;;  %s500_s30 = int_to_ptr.hbm [resolvable:$true] %s499_s30 }
  0x25   : > { %s501_s3 = scalar_lea.hbm %s500_s30, 8  ;;  %p506_p7 = scmp.lt.s32.totalorder %s500_s30, %s728_s2 }
  0x26   : > { %p502_p4 = scmp.ne.s32.totalorder %s500_s30, %s501_s3  ;;  %p507_p8 = scmp.lt.s32.totalorder %s505_s6, %s501_s3 }
  0x28   : > { %p503_p5 = pnand %p502_p4, %p637_p9  ;;  %p508_p10 = por %p507_p8, %p506_p7 }
  0x2a   : > { %p504_p6 = pneg %p503_p5 }
  0x2c   : > { %p509_p13 = pnand %p508_p10, %p504_p6 }
  0x94   : > { %v187_v5 = vpop.permute.xlu0 %186 }
  0x95   : > { %v191_v7 = vperm.slane %v187_v5, %v190_v4 }
  0x97   : > { %v193_v8 = vmul.f32 %v191_v7, %v673_v6 }
  0x99   : > { %195 = vst [vmem:[#allocation1] ss:$2 sm:$0xff] %v193_v8 }
  0xa0   : > { %v196_v9 = vld.sshfl [vmem:[#allocation1] sm:$0xff pattern:$0x75316420]  ;;  %v197_v10 = vld.sshfl [vmem:[#allocation1 + $0x8] sm:$0xff pattern:$0x75316420] }
  0xa1   : > { %v201_v11 = vsel %vm200_vm0, %v196_v9, 0.0  ;;  %v208_v12 = vsel %vm200_vm0, %v197_v10, 0.0 }
  0xa2   : > { %v202_v13 = vrot.slane %v201_v11, 4  ;;  %v209_v14 = vrot.slane %v208_v12, 4 }
  0xa4   : > { %v203_v15 = vadd.f32 %v202_v13, %v201_v11  ;;  %v210_v16 = vadd.f32 %v209_v14, %v208_v12 }
  0xa6   : > { %v204_v17 = vrot.slane %v203_v15, 2  ;;  %v211_v18 = vrot.slane %v210_v16, 2 }
  0xa8   : > { %v205_v19 = vadd.f32 %v204_v17, %v203_v15  ;;  %v212_v20 = vadd.f32 %v211_v18, %v210_v16 }
  0xaa   : > { %v206_v21 = vrot.slane %v205_v19, 1  ;;  %v213_v22 = vrot.slane %v212_v20, 1 }
  0xac   : > { %v207_v23 = vadd.f32 %v206_v21, %v205_v19  ;;  %v214_v24 = vadd.f32 %v213_v22, %v212_v20 }
  0xae   : > { %v373_v25 = vmul.f32 -1.442695, %v207_v23  ;;  %v374_v26 = vmul.f32 -1.442695, %v214_v24 }
  0xb0   : > { %447 = vpow2.f32 %v373_v25 }
  0xb1   : > { %449 = vpow2.f32 %v374_v26 }
  0xb6   : > { %v448_v27 = vpop.eup %447 }
  0xb7   : > { %v450_v28 = vpop.eup %449  ;;  %v221_v29 = vadd.f32 1.0, %v448_v27 }
  0xb8   : > { %v222_v30 = vadd.f32 1.0, %v450_v28 }
  0xb9   : > { %451 = vrcp.f32 %v221_v29  ;;  %vm228_vm3 = vweird.f32 %v221_v29  ;;  %v234_v42 = vand.u32 2147483648, %v221_v29  ;;  %v232_v44 = vand.u32 2147483647, %v221_v29 }
  0xba   : > { %453 = vrcp.f32 %v222_v30  ;;  %v249_v38 = vand.u32 2147483648, %v222_v30  ;;  %v247_v40 = vand.u32 2147483647, %v222_v30  ;;  %vm243_vm5 = vweird.f32 %v222_v30 }
  0xbb   : > { %v235_v49 = vor.u32 1.1754944e-38, %v234_v42  ;;  %vm233_vm8 = vcmp.eq.f32.partialorder %v232_v44, 8.507059e+37 }
  0xbc   : > { %v250_v46 = vor.u32 1.1754944e-38, %v249_v38  ;;  %vm248_vm7 = vcmp.eq.f32.partialorder %v247_v40, 8.507059e+37 }
  0xbf   : > { %v452_v31 = vpop.eup %451 }
  0xc0   : > { %v454_v32 = vpop.eup %453  ;;  %v224_v33 = vmul.f32 %v452_v31, %v221_v29  ;;  %vm229_vm1 = vweird.f32 %v452_v31 }
  0xc1   : > { %v239_v34 = vmul.f32 %v454_v32, %v222_v30  ;;  %vm244_vm2 = vweird.f32 %v454_v32  ;;  %vm679_vm4 = vmor %vm228_vm3, %vm229_vm1 }
  0xc2   : > { %v225_v35 = vsub.f32 1.0, %v224_v33  ;;  %vm245_vm6 = vmor %vm243_vm5, %vm244_vm2 }
  0xc3   : > { %v240_v36 = vsub.f32 1.0, %v239_v34 }
  0xc4   : > { %v226_v37 = vmul.f32 %v452_v31, %v225_v35 }
  0xc5   : > { %v241_v39 = vmul.f32 %v454_v32, %v240_v36 }
  0xc6   : > { %v227_v41 = vadd.f32 %v452_v31, %v226_v37 }
  0xc7   : > { %v242_v45 = vadd.f32 %v454_v32, %v241_v39 }
  0xc8   : > { %v231_v47 = vsel %vm679_vm4, %v452_v31, %v227_v41 }
  0xc9   : > { %v246_v48 = vsel %vm245_vm6, %v454_v32, %v242_v45  ;;  %v236_v52 = vsel %vm233_vm8, %v235_v49, %v231_v47 }
  0xca   : > { %v251_v50 = vsel %vm248_vm7, %v250_v46, %v246_v48 }
  0xcb   : > { %v255_v51 = vrot.slane %v251_v50, 4 }
  0xcd   : > { %v256_v53 = vsel %vm200_vm0, %v236_v52, %v255_v51 }
  0xce   : > { %v258_v54 = vmul.f32 %v256_v53, %v673_v6 }
  0xd0   : > { %259 = vst [vmem:[%s179_s12] sm:$0xff] %v258_v54 }
  0xd1   : > { %512 = shalt.err (!%p509_p13)
}
  0xd2   : > { %384 = dma.vmem_to_hbm [thread:$0]  (%p637_p9), %s277_s27, 128, %s279_s28, %s261_s29  }
  0xd3 PF: > { %s290_s7 = sand.u32 1, %s547_s9   ;;  %p391_p0 = pnand %p366_p12, %p644_p11 }
  0xd4   : > { %s291_s16 = scalar_lea.sflag [#allocation4], %s290_s7 }
  0xd5   : > { %p392_p1 = pneg %p391_p0 }
  0xd7   : > { %542 = dma.done.wait (%p392_p1), %s291_s16, 128  }
  0xd8   : > { %544 = vsyncadd (%p392_p1), %s291_s16, 4294967168  ;;  %s18_s14 = sadd.s32 1, %s567_s14   ;;  %s735_s9 = smov %s551_s10 }
  0xd9   : > { %p15_p2 = scmp.ge.s32.totalorder %s18_s14, 4   ;;  %s736_s10 = smov %s555_s11 }
  0xda   : > { %s737_s11 = smov %s642_s23  ;;  %s738_s12 = smov %s563_s13 }
  0xdb   : > { %s739_s13 = smov %s741_s17  ;;  %17 = sbr.rel (!%p15_p2) target bundleno = 6 (0x6), region = 73 }
  0xe0   :  { %297 = vsyncpa [#allocation3], 1 }
  0xe1   :  { %299 = vsyncpa [#allocation3 + $0x1], 1 }
  0xe2   :  { %300 = vsyncpa [#allocation4], 1 }
  0xe3   :  { %302 = vsyncpa [#allocation4 + $0x1], 1 }

</bundles_post_ra>
